<compile_context>
chip_gen: v5e
topology: v5e:2x2
jax: 0.10.0
libtpu: 0.0.40
codegen_flags: <defaults>
</compile_context>

<pallas_src>
import jax
import jax.numpy as jnp
from jax.experimental import pallas as pl
from jax.experimental.pallas import tpu as pltpu


def _pooler_kernel(x_ref, w_ref, b_ref, o_ref):
    # x_ref : (Bp, H)   first-token activations (padded batch; seq dim squeezed or pre-sliced)
    # w_ref : (TN, H)   tile of un-transposed nn.Linear weight (rows = output features)
    # b_ref : (1, TN)   bias tile
    # o_ref : (Bp, TN)  output tile
    # Contract x dim 1 with w dim 1  ->  y[b, o] = sum_h x[b, h] * w[o, h]  (= x @ W^T)
    y = jax.lax.dot_general(
        x_ref[...], w_ref[...],
        dimension_numbers=(((1,), (1,)), ((), ())),
        preferred_element_type=jnp.float32,
    )
    y = y + b_ref[...].astype(jnp.float32)
    o_ref[...] = jnp.tanh(y).astype(o_ref.dtype)


def _default_num_tiles(H):
    """1 tile on single-TC chips (v5e/v6e); 2 even tiles on v7x when H permits."""
    try:
        kind = jax.devices()[0].device_kind.lower()
    except Exception:
        kind = ""
    two_tc = ("v7" in kind) or ("7x" in kind)
    if two_tc and H % 256 == 0:           # tn = H/2 must be a multiple of 128
        return 2
    return 1


def bert_pooler(hidden_states, weight, bias, *, num_tiles=None):
    """hidden_states: (B, S, H); weight: (H, H) as in nn.Linear (un-transposed); bias: (H,)."""
    B, S, H = hidden_states.shape
    assert weight.shape == (H, H) and bias.shape == (H,)
    bias2 = bias.reshape(1, H)            # 2-D for TPU-friendly layout

    itemsize = lambda a: jnp.dtype(a.dtype).itemsize

    # --- tile count: 1 step on single-TC chips; even 2-way split on v7x ---
    if num_tiles is None:
        num_tiles = _default_num_tiles(H)
    if num_tiles > 1 and (H % num_tiles != 0 or (H // num_tiles) % 128 != 0):
        num_tiles = 1                     # fall back to the single-block path
    tn = H // num_tiles
    grid = (num_tiles,)

    # --- pad B to a multiple of 8 (unmasked vst, full sublanes); slice back after ---
    pad_b = (-B) % 8
    Bp = B + pad_b
    if pad_b:
        # Slice the first token in the wrapper (tiny: B*H) then pad the batch.
        x_in = jnp.pad(hidden_states[:, 0, :], ((0, pad_b), (0, 0)))
        x_spec = pl.BlockSpec((Bp, H), lambda j: (0, 0))
    else:
        # Fold the first-token slice into the kernel: pin seq block 0 and squeeze it.
        x_in = hidden_states
        x_spec = pl.BlockSpec((B, None, H), lambda j: (0, 0, 0))

    # --- tight scoped-VMEM estimate: double-buffered tiles + small headroom ---
    x_is, w_is, b_is = itemsize(hidden_states), itemsize(weight), itemsize(bias)
    vmem_est = (2 * Bp * H * x_is          # resident first-token block (double-buffered)
                + 2 * tn * H * w_is        # streamed weight tiles
                + 2 * tn * b_is            # bias tiles
                + 2 * Bp * tn * x_is       # output tiles
                + (2 << 20))               # headroom for internal scratch
    vmem_limit = int(max(vmem_est, 4 << 20))

    cost = pl.CostEstimate(
        flops=2 * B * H * H,
        transcendentals=B * H,
        bytes_accessed=(H * H * w_is            # weight read (the roofline)
                        + B * H * x_is          # first-token read
                        + B * H * x_is          # output write
                        + H * b_is),            # bias read
    )

    out = pl.pallas_call(
        _pooler_kernel,
        out_shape=jax.ShapeDtypeStruct((Bp, H), hidden_states.dtype),
        grid=grid,
        in_specs=[
            x_spec,
            # TN output rows of W per step (contraction dim H kept whole).
            pl.BlockSpec((tn, H), lambda j: (j, 0)),
            pl.BlockSpec((1, tn), lambda j: (0, j)),
        ],
        out_specs=pl.BlockSpec((Bp, tn), lambda j: (0, j)),
        compiler_params=pltpu.CompilerParams(
            dimension_semantics=("parallel",),   # v7x's 2 TCs split the weight stream
            vmem_limit_bytes=vmem_limit,
        ),
        cost_estimate=cost,
    )(x_in, weight, bias2)

    return out[:B] if pad_b else out


def _reference(hidden_states, weight, bias):
    x = hidden_states[:, 0].astype(jnp.float32)
    w = weight.astype(jnp.float32)
    b = bias.astype(jnp.float32)
    return jnp.tanh(x @ w.T + b)


if __name__ == "__main__":
    key = jax.random.PRNGKey(0)

    # --- Test 1: canonical small shapes (B=2, S=8, H=32), f32, single block path ---
    B, S, H = 2, 8, 32
    k_x, k_w, k_b, key = *jax.random.split(key, 3), jax.random.fold_in(key, 1)
    bound = 1.0 / (H ** 0.5)
    hs = jax.random.normal(k_x, (B, S, H), dtype=jnp.float32)
    w = jax.random.uniform(k_w, (H, H), minval=-bound, maxval=bound, dtype=jnp.float32)
    b = jax.random.uniform(k_b, (H,), minval=-bound, maxval=bound, dtype=jnp.float32)

    out = jax.block_until_ready(bert_pooler(hs, w, b))
    ref = _reference(hs, w, b)
    assert out.shape == (B, H)
    assert jnp.allclose(out, ref, atol=1e-4, rtol=1e-4)

    # --- Test 2: odd B + H multiple of 128, forced 2-way tiling (exercises tiled
    #     index maps, bias tiling, and B-padding path on any chip) ---
    B2, S2, H2 = 3, 4, 256
    k_x, k_w, k_b, key = *jax.random.split(key, 3), jax.random.fold_in(key, 2)
    bound2 = 1.0 / (H2 ** 0.5)
    hs2 = jax.random.normal(k_x, (B2, S2, H2), dtype=jnp.float32)
    w2 = jax.random.uniform(k_w, (H2, H2), minval=-bound2, maxval=bound2, dtype=jnp.float32)
    b2 = jax.random.uniform(k_b, (H2,), minval=-bound2, maxval=bound2, dtype=jnp.float32)

    out2 = jax.block_until_ready(bert_pooler(hs2, w2, b2, num_tiles=2))
    ref2 = _reference(hs2, w2, b2)
    assert out2.shape == (B2, H2)
    assert jnp.allclose(out2, ref2, atol=1e-4, rtol=1e-4)

    # --- Test 3: bf16 weight/activations (recommended storage dtype for the weight
    #     stream), f32 accumulation inside the kernel; looser tolerance ---
    out3 = jax.block_until_ready(
        bert_pooler(hs2.astype(jnp.bfloat16), w2.astype(jnp.bfloat16),
                    b2.astype(jnp.bfloat16), num_tiles=1))
    ref3 = _reference(hs2, w2, b2)
    assert out3.shape == (B2, H2)
    assert jnp.allclose(out3.astype(jnp.float32), ref3, atol=3e-2, rtol=3e-2)

    print("KERNEL_OK")
</pallas_src>

<mosaic_0001>
module attributes {stable_mosaic.version = 11 : i64} {
  func.func @_pooler_kernel(%arg0: i32, %arg1: memref<8x32xf32, #tpu.memory_space<vmem>>, %arg2: memref<32x32xf32, #tpu.memory_space<vmem>>, %arg3: memref<1x32xf32, #tpu.memory_space<vmem>>, %arg4: memref<8x32xf32, #tpu.memory_space<vmem>>) attributes {dimension_semantics = [#tpu.dimension_semantics<parallel>], iteration_bounds = array<i64: 1>, scalar_prefetch = 0 : i64, scratch_operands = 0 : i64, tpu.core_type = #tpu.core_type<tc>, window_params = [{pipeline_mode = #tpu.pipeline_mode<synchronous>, transform_indices = @transform_0, window_bounds = array<i64: 8, 32>}, {transform_indices = @transform_1, window_bounds = array<i64: 32, 32>}, {transform_indices = @transform_2, window_bounds = array<i64: 1, 32>}, {transform_indices = @transform_3, window_bounds = array<i64: 8, 32>}]} {
    %c0 = arith.constant 0 : index
    %c0_0 = arith.constant 0 : index
    %0 = vector.load %arg1[%c0, %c0_0] : memref<8x32xf32, #tpu.memory_space<vmem>>, vector<8x32xf32>
    %c0_1 = arith.constant 0 : index
    %c0_2 = arith.constant 0 : index
    %1 = vector.load %arg2[%c0_1, %c0_2] : memref<32x32xf32, #tpu.memory_space<vmem>>, vector<32x32xf32>
    %cst = arith.constant dense<0.000000e+00> : vector<8x32xf32>
    %2 = tpu.matmul %0, %1, %cst {dimension_numbers = #tpu.dot_dimension_numbers<[1], [1], [0], [0], [0, 0, 1, 0], [], []>} : vector<8x32xf32>, vector<32x32xf32>, vector<8x32xf32> -> vector<8x32xf32>
    %c0_3 = arith.constant 0 : index
    %c0_4 = arith.constant 0 : index
    %3 = vector.load %arg3[%c0_3, %c0_4] : memref<1x32xf32, #tpu.memory_space<vmem>>, vector<1x32xf32>
    %4 = vector.broadcast %3 : vector<1x32xf32> to vector<8x32xf32>
    %5 = arith.addf %2, %4 : vector<8x32xf32>
    %6 = math.tanh %5 : vector<8x32xf32>
    %c0_5 = arith.constant 0 : index
    %c0_6 = arith.constant 0 : index
    %7 = vector.load %arg4[%c0_5, %c0_6] : memref<8x32xf32, #tpu.memory_space<vmem>>, vector<8x32xf32>
    tpu.vector_store %arg4[%c0_5, %c0_6], %6 {strides = array<i32>} : memref<8x32xf32, #tpu.memory_space<vmem>>, vector<8x32xf32>,
    return
  }
  func.func @transform_0(%arg0: i32) -> (i32, i32) {
    %c0_i32 = arith.constant 0 : i32
    %c0_i32_0 = arith.constant 0 : i32
    %c0_i32_1 = arith.constant 0 : i32
    return %c0_i32, %c0_i32_0 : i32, i32
  }
  func.func @transform_1(%arg0: i32) -> (i32, i32) {
    %c0_i32 = arith.constant 0 : i32
    %c0_i32_0 = arith.constant 0 : i32
    return %arg0, %c0_i32 : i32, i32
  }
  func.func @transform_2(%arg0: i32) -> (i32, i32) {
    %c0_i32 = arith.constant 0 : i32
    %c0_i32_0 = arith.constant 0 : i32
    return %c0_i32, %arg0 : i32, i32
  }
  func.func @transform_3(%arg0: i32) -> (i32, i32) {
    %c0_i32 = arith.constant 0 : i32
    %c0_i32_0 = arith.constant 0 : i32
    return %c0_i32, %arg0 : i32, i32
  }
}

</mosaic_0001>

<bundles_post_ra>
// kernel: tpu_custom_call.1
= control target key start
LH: loop header
LB: loop body
LE: loop exit
PB: predicated region body
PF: predicated region fallthrough
CT: control target
= control target key end

     0   :  { %8 = vsyncpa [#allocation3], 0  ;;  %s244_s0 = inlined_call_operand.hbm [shape: f32[8,32], index: 0, kind: input, shape index: {}]   ;;  %s245_s1 = inlined_call_operand.hbm [shape: f32[32,32], index: 1, kind: input, shape index: {}]   ;;  %s246_s2 = inlined_call_operand.vmem [shape: f32[1,32], index: 2, kind: input, shape index: {}]   ;;  %s247_s3 = inlined_call_operand.hbm [shape: f32[8,32], index: 3, kind: output, shape index: {}]  }
   0x1   :  { %9 = vsyncpa [#allocation6], 0 }
   0x2   :  { %10 = vsyncpa [#allocation4], 0  ;;  %s16_s14 = sshll.u32 %s244_s0, 4  ;;  %s201_s15 = smov [#allocation2]   ;;  %s17_s14 = int_to_ptr.hbm [resolvable:$true] %s16_s14 }
   0x3   :  { %s18_s16 = sshll.u32 %s201_s15, 4  ;;  %s26_s19 = sshll.u32 %s245_s1, 4  ;;  %s19_s16 = int_to_ptr.vmem [resolvable:$true] %s18_s16  ;;  %s27_s19 = int_to_ptr.hbm [resolvable:$true] %s26_s19 }
   0x4   :  { %21 = dma.hbm_to_vmem [thread:$0]  %s17_s14, 128, %s19_s16, [#allocation3]  }
   0x5   :  { %s202_s20 = smov [#allocation5]   ;;  %s203_s22 = smov 128  }
   0x6   :  { %s28_s21 = sshll.u32 %s202_s20, 4  ;;  %s204_s23 = smov 8   ;;  %s29_s21 = int_to_ptr.vmem [resolvable:$true] %s28_s21 }
   0x7   :  { %34 = dma.hbm_to_vmem [thread:$0]  %s27_s19, 512, %s29_s21, [#allocation6], %s203_s22, %s203_s22, %s204_s23  }
   0x8   :  { %195 = dma.done.wait [#allocation3], 128  }
   0x9   :  { %196 = vsyncadd [#allocation3], 4294967168 }
   0xa   :  { %197 = dma.done.wait [#allocation6], 512  }
   0xb   :  { %198 = vsyncadd [#allocation6], 4294966784  ;;  %vm54_vm0 = vcmask 261120   ;;  %v49_v0 = vld [vmem:[#allocation5 + $0x18] sm:$0xff]  ;;  %v48_v1 = vld [vmem:[#allocation5 + $0x10] sm:$0xff]  ;;  %s205_s24 = smov [#allocation7]  }
   0xc   :  { %110 = vmatpush.xpose.msk.msra.mxu0 %vm54_vm0, %v49_v0  ;;  %v47_v2 = vld [vmem:[#allocation5 + $0x8] sm:$0xff]  ;;  %v46_v3 = vld [vmem:[#allocation5] sm:$0xff]  ;;  %v45_v4 = vld [vmem:[#allocation2] sm:$0xff]  ;;  %s97_s25 = sshll.u32 %s205_s24, 4  ;;  %s99_s28 = sshll.u32 %s247_s3, 4  ;;  %s98_s25 = int_to_ptr.vmem [resolvable:$true] %s97_s25  ;;  %s100_s28 = int_to_ptr.hbm [resolvable:$true] %s99_s28 }
   0xd   :  { %v120_v5 = vld [vmem:[%s246_s2] ss:$0 sm:$0xff] }
  0x10   :  { %111 = vmatpush.xpose.msk.msra.mxu0 %vm54_vm0, %v48_v1 }
  0x14   :  { %112 = vmatpush.xpose.msk.msra.mxu0 %vm54_vm0, %v47_v2 }
  0x18   :  { %113 = vmatpush.xpose.msk.msra.mxu0 %vm54_vm0, %v46_v3 }
  0x1b   :  { %114 = vmatmul.msk.f32.vlgmr.msra.gmra.mxu0 %vm54_vm0, %v45_v4 }
  0x98   :  { %v87_v6 = vpop.f32.mrf.mxu0 }
  0x99   :  { %v88_v7 = vadd.f32 %v120_v5, %v87_v6 }
  0x9b   :  { %121 = vtanh.f32 %v88_v7 }
  0xa1   :  { %v122_v8 = vpop.eup %121 }
  0xa2   :  { %91 = vst.msk [vmem:[#allocation7] sm:$0xff] %vm54_vm0, %v122_v8 }
  0xa3   :  { %102 = dma.vmem_to_hbm [thread:$0]  %s98_s25, 128, %s100_s28, [#allocation4]  }
  0xa4   :  { %199 = dma.done.wait [#allocation4], 128  }
  0xa5   :  { %200 = vsyncadd [#allocation4], 4294967168 }
  0xa6   :  { %107 = vsyncpa [#allocation3], 1 }
  0xa7   :  { %108 = vsyncpa [#allocation6], 1 }
  0xa8   :  { %109 = vsyncpa [#allocation4], 1 }

</bundles_post_ra>
